<compile_context>
chip_gen: v7x
topology: tpu7x:2x2x1
jax: 0.10.0
libtpu: 0.0.40
codegen_flags: <defaults>
</compile_context>

<pallas_src>
import functools
import random
from functools import lru_cache

import numpy as np

import jax
import jax.numpy as jnp
from jax.experimental import pallas as pl
from jax.experimental.pallas import tpu as pltpu


def _round_up(x, m):
    return ((x + m - 1) // m) * m


@lru_cache(maxsize=8)
def _dft_basis(L, Lp):
    """bf16 (Lp, Lp) cos/sin DFT basis, zero-padded beyond L, scaled by 1/sqrt(L).

    C[n,k] = cos(2*pi*(n*k mod L)/L)/sqrt(L),  S[n,k] = sin(...)/sqrt(L) for n,k < L.
    The two matmuls (forward + inverse) each carry one 1/sqrt(L) factor, so the
    kernel needs no final 1/L rescale pass.
    """
    n = np.arange(L, dtype=np.int64)
    nk = np.outer(n, n) % L                       # exact for any practical L
    ang = (2.0 * np.pi / L) * nk.astype(np.float64)
    scale = 1.0 / np.sqrt(float(L))
    cos_b = np.zeros((Lp, Lp), dtype=np.float32)
    sin_b = np.zeros((Lp, Lp), dtype=np.float32)
    cos_b[:L, :L] = (np.cos(ang) * scale).astype(np.float32)
    sin_b[:L, :L] = (np.sin(ang) * scale).astype(np.float32)
    return (jnp.asarray(cos_b, dtype=jnp.bfloat16),
            jnp.asarray(sin_b, dtype=jnp.bfloat16))


def _phase_perturb_kernel(max_perturb, x_ref, u_ref, cos_ref, sin_ref, o_ref):
    """One (tile_m, Lp) row tile of the (M_pad, Lp) signal slab.

    x_ref   : (tile_m, Lp) f32   signal rows (cast to bf16 in-kernel)
    u_ref   : (tile_m, Lp) bf16  phase noise u ~ U(-max_perturb, max_perturb)
    cos_ref : (Lp, Lp) bf16      C[n,k] = cos(2*pi*(n*k mod L)/L)/sqrt(L)  (symmetric)
    sin_ref : (Lp, Lp) bf16      S[n,k] = sin(2*pi*(n*k mod L)/L)/sqrt(L)  (symmetric)
    o_ref   : (tile_m, Lp) f32   Re(ifft(fft(x) * exp(i*u)))
    """
    x = x_ref[...].astype(jnp.bfloat16)   # in-kernel cast: no extra host HBM pass
    Cm = cos_ref[...]
    Sm = sin_ref[...]

    # Forward DFT of a real signal (bf16 operands, f32 MXU accumulation).
    #   f_re = Re(F)/sqrt(L),   g = -Im(F)/sqrt(L)   (sign folded into rotation)
    f_re = jnp.dot(x, Cm, preferred_element_type=jnp.float32)
    g = jnp.dot(x, Sm, preferred_element_type=jnp.float32)

    u = u_ref[...].astype(jnp.float32)
    if max_perturb <= 0.5:
        # Small-angle polynomial (|u| <= 0.5): max abs error < 3e-5, ~8 VPU ops
        # per element instead of the full range-reduced sincos expansion.
        u2 = u * u
        cu = 1.0 + u2 * (-0.5 + u2 * (1.0 / 24.0))
        su = u * (1.0 + u2 * (-1.0 / 6.0 + u2 * (1.0 / 120.0)))
    else:
        cu = jnp.cos(u)
        su = jnp.sin(u)

    # Rotate the spectrum by the phase noise: F' = F * exp(i*u).
    # With f_im = -g:  Re(F') = f_re*cu + g*su,  Im(F') = f_re*su - g*cu.
    p_re = (f_re * cu + g * su).astype(jnp.bfloat16)
    p_im = (f_re * su - g * cu).astype(jnp.bfloat16)

    # Real part of the inverse DFT (basis symmetric; carries the other 1/sqrt(L)):
    #   y[n] = (1/L) * sum_k ( Re(F'[k]) C[n,k] - Im(F'[k]) S[n,k] )
    y = (jnp.dot(p_re, Cm, preferred_element_type=jnp.float32)
         - jnp.dot(p_im, Sm, preferred_element_type=jnp.float32))

    o_ref[...] = y.astype(o_ref.dtype)


def _vmem_cap_bytes():
    """Per-core VMEM cap with headroom, by chip family."""
    try:
        kind = jax.devices()[0].device_kind.lower()
    except Exception:
        kind = ""
    if "v5" in kind or "v6" in kind:
        return 100 << 20     # 128-MiB-VMEM parts: let large-L bases stay resident
    return 48 << 20          # v7x (64 MiB physical) / unknown: leave headroom


def _vmem_budget(tile_m, Lp):
    """Bases (default double-buffered) + I/O tiles + kernel temporaries."""
    basis = 2 * (2 * Lp * Lp * 2)           # two bf16 (Lp,Lp) bases, 2 buffers each
    io = 2 * tile_m * Lp * (4 + 2 + 4)      # double-buffered x(f32) + u(bf16) + out(f32)
    tmp = 24 * tile_m * Lp                  # f32 f_re/g/cu/su + bf16 p_re/p_im
    return basis + io + tmp + (4 << 20)     # + slack for compiler-managed scratch


def _pick_tile_m(M, Lp, tile_m_hint=None):
    cap = _vmem_cap_bytes()
    if tile_m_hint is not None:
        tile = max(8, (int(tile_m_hint) // 8) * 8)
    else:
        # Aim for >= ~2 MiB of HBM traffic per grid step (amortize ~0.35us/step).
        target = (2 << 20) // max(1, 10 * Lp)
        tile = min(2048, max(256, _round_up(target, 8)))
        tile = min(tile, _round_up(M, 8))
        # v7x megacore: keep >= 2 grid steps on the "parallel" axis when M allows.
        if _round_up(M, tile) // tile < 2 and tile >= 16:
            tile = max(8, ((tile // 2) // 8) * 8)
    tile = max(8, min(tile, _round_up(M, 8)))
    tile = (tile // 8) * 8
    # Shrink the row tile until the VMEM budget fits the per-core cap.
    while tile > 8 and _vmem_budget(tile, Lp) > cap:
        tile = max(8, ((tile // 2) // 8) * 8)
    return tile


def _phase_perturb_pallas(x2d, u2d, cos_b, sin_b, *, max_perturb, tile_m, vmem_bytes):
    M, Lp = x2d.shape
    assert M % tile_m == 0, (M, tile_m)

    kernel = functools.partial(_phase_perturb_kernel, float(max_perturb))

    return pl.pallas_call(
        kernel,
        out_shape=jax.ShapeDtypeStruct((M, Lp), jnp.float32),
        grid=(M // tile_m,),
        in_specs=[
            pl.BlockSpec((tile_m, Lp), lambda i: (i, 0)),   # signal rows (f32)
            pl.BlockSpec((tile_m, Lp), lambda i: (i, 0)),   # phase noise (bf16)
            pl.BlockSpec((Lp, Lp), lambda i: (0, 0)),       # cos basis (constant block)
            pl.BlockSpec((Lp, Lp), lambda i: (0, 0)),       # sin basis (constant block)
        ],
        out_specs=pl.BlockSpec((tile_m, Lp), lambda i: (i, 0)),
        compiler_params=pltpu.CompilerParams(
            dimension_semantics=("parallel",),
            vmem_limit_bytes=int(vmem_bytes),
        ),
    )(x2d, u2d, cos_b, sin_b)


def phase_perturbation(signal, key, *, max_perturb=0.1, p=0.5, dice=None, tile_m=None):
    """JAX/Pallas port of PhasePerturbation.forward.

    signal: (B, C, L) float.  The stochastic dice roll (random.random() < p) is a
    host-side Python branch, exactly like the torch module; pass `dice` to make it
    deterministic.  Output is f32 (matching the numpy .real path).
    """
    if dice is None:
        dice = random.random() < p
    if not dice:
        return signal

    B, C, L = signal.shape
    M = B * C
    Lp = _round_up(L, 128)          # lane-aligned DFT width; basis zero-padded beyond L

    tile = _pick_tile_m(M, Lp, tile_m)
    M_pad = _round_up(M, tile)

    x2d = jnp.asarray(signal, dtype=jnp.float32).reshape(M, L)
    if (M_pad, Lp) != (M, L):
        x2d = jnp.pad(x2d, ((0, M_pad - M), (0, Lp - L)))

    cos_b, sin_b = _dft_basis(L, Lp)

    # TODO(synk): numpy's global np.random stream cannot be reproduced; u is drawn
    # from jax.random instead (same U(-mp, mp) distribution, different stream).
    # On-chip pltpu.prng_* would remove this HBM stream but has no CPU/interpret
    # lowering, so the noise is generated host-side for portability.
    u = jax.random.uniform(
        key, (M_pad, Lp), dtype=jnp.float32,
        minval=-float(max_perturb), maxval=float(max_perturb),
    ).astype(jnp.bfloat16)

    vmem_bytes = min(_vmem_cap_bytes(), max(32 << 20, _vmem_budget(tile, Lp)))

    out2d = _phase_perturb_pallas(x2d, u, cos_b, sin_b,
                                  max_perturb=max_perturb, tile_m=tile,
                                  vmem_bytes=vmem_bytes)
    return out2d[:M, :L].reshape(B, C, L)


if __name__ == "__main__":
    key = jax.random.PRNGKey(0)
    k_sig, k_noise, k_sig2, k_noise2 = jax.random.split(key, 4)

    B, C, L = 2, 4, 128
    signal = jax.random.normal(k_sig, (B, C, L), dtype=jnp.float32)

    # 1) max_perturb = 0: pure DFT -> iDFT round trip must reproduce the input
    #    (validates the matmul-DFT machinery; bf16 basis + f32 accumulation).
    out0 = jax.block_until_ready(
        phase_perturbation(signal, k_noise, max_perturb=0.0, p=0.5, dice=True))
    assert out0.shape == signal.shape and out0.dtype == jnp.float32
    err0 = out0 - signal
    assert float(jnp.max(jnp.abs(err0))) < 5e-2, float(jnp.max(jnp.abs(err0)))
    assert float(jnp.sqrt(jnp.mean(err0 ** 2))) < 1.5e-2

    # 2) max_perturb = 0.1: perturbed path — noise applied, energy ~ preserved
    #    (phase rotation preserves |F|, so Parseval holds up to bf16 numerics).
    out1 = jax.block_until_ready(
        phase_perturbation(signal, k_noise, max_perturb=0.1, p=0.5, dice=True))
    assert out1.shape == signal.shape and out1.dtype == jnp.float32
    assert bool(jnp.all(jnp.isfinite(out1)))
    mean_dev = float(jnp.mean(jnp.abs(out1 - out0)))
    assert 5e-3 < mean_dev < 1.0, mean_dev               # noise really applied
    ratio = float(jnp.sum(out1 ** 2) / jnp.sum(signal ** 2))
    assert 0.93 < ratio < 1.07, ratio                    # small-phase-noise energy

    # 3) dice miss returns the input unchanged.
    out_pass = phase_perturbation(signal, k_noise, max_perturb=0.1, p=0.5, dice=False)
    assert out_pass is signal

    # 4) multi-tile grid + row padding + non-lane-aligned L (M = 15, L = 200 -> Lp = 256).
    B2, C2, L2 = 3, 5, 200
    sig2 = jax.random.normal(k_sig2, (B2, C2, L2), dtype=jnp.float32)
    out2 = jax.block_until_ready(
        phase_perturbation(sig2, k_noise2, max_perturb=0.0, p=0.5, dice=True, tile_m=8))
    assert out2.shape == sig2.shape
    err2 = out2 - sig2
    assert float(jnp.max(jnp.abs(err2))) < 8e-2, float(jnp.max(jnp.abs(err2)))
    assert float(jnp.sqrt(jnp.mean(err2 ** 2))) < 3e-2

    print("KERNEL_OK")
</pallas_src>

<mosaic_0001>
module attributes {stable_mosaic.version = 11 : i64} {
  func.func @_phase_perturb_kernel(%arg0: i32, %arg1: memref<8x128xf32, #tpu.memory_space<vmem>>, %arg2: memref<8x128xbf16, #tpu.memory_space<vmem>>, %arg3: memref<128x128xbf16, #tpu.memory_space<vmem>>, %arg4: memref<128x128xbf16, #tpu.memory_space<vmem>>, %arg5: memref<8x128xf32, #tpu.memory_space<vmem>>) attributes {dimension_semantics = [#tpu.dimension_semantics<parallel>], iteration_bounds = array<i64: 1>, scalar_prefetch = 0 : i64, scratch_operands = 0 : i64, tpu.core_type = #tpu.core_type<tc>, window_params = [{transform_indices = @transform_0, window_bounds = array<i64: 8, 128>}, {transform_indices = @transform_1, window_bounds = array<i64: 8, 128>}, {pipeline_mode = #tpu.pipeline_mode<synchronous>, transform_indices = @transform_2, window_bounds = array<i64: 128, 128>}, {pipeline_mode = #tpu.pipeline_mode<synchronous>, transform_indices = @transform_3, window_bounds = array<i64: 128, 128>}, {transform_indices = @transform_4, window_bounds = array<i64: 8, 128>}]} {
    %c0 = arith.constant 0 : index
    %c0_0 = arith.constant 0 : index
    %0 = vector.load %arg1[%c0, %c0_0] : memref<8x128xf32, #tpu.memory_space<vmem>>, vector<8x128xf32>
    %1 = arith.truncf %0 : vector<8x128xf32> to vector<8x128xbf16>
    %c0_1 = arith.constant 0 : index
    %c0_2 = arith.constant 0 : index
    %2 = vector.load %arg3[%c0_1, %c0_2] : memref<128x128xbf16, #tpu.memory_space<vmem>>, vector<128x128xbf16>
    %c0_3 = arith.constant 0 : index
    %c0_4 = arith.constant 0 : index
    %3 = vector.load %arg4[%c0_3, %c0_4] : memref<128x128xbf16, #tpu.memory_space<vmem>>, vector<128x128xbf16>
    %cst = arith.constant dense<0.000000e+00> : vector<8x128xf32>
    %4 = tpu.matmul %1, %2, %cst {dimension_numbers = #tpu.dot_dimension_numbers<[1], [0], [0], [1], [0, 0, 1, 1], [], []>} : vector<8x128xbf16>, vector<128x128xbf16>, vector<8x128xf32> -> vector<8x128xf32>
    %cst_5 = arith.constant dense<0.000000e+00> : vector<8x128xf32>
    %5 = tpu.matmul %1, %3, %cst_5 {dimension_numbers = #tpu.dot_dimension_numbers<[1], [0], [0], [1], [0, 0, 1, 1], [], []>} : vector<8x128xbf16>, vector<128x128xbf16>, vector<8x128xf32> -> vector<8x128xf32>
    %c0_6 = arith.constant 0 : index
    %c0_7 = arith.constant 0 : index
    %6 = vector.load %arg2[%c0_6, %c0_7] : memref<8x128xbf16, #tpu.memory_space<vmem>>, vector<8x128xbf16>
    %7 = arith.extf %6 : vector<8x128xbf16> to vector<8x128xf32>
    %8 = arith.mulf %7, %7 : vector<8x128xf32>
    %cst_8 = arith.constant 0.0416666679 : f32
    %9 = vector.broadcast %cst_8 : f32 to vector<8x128xf32>
    %10 = arith.mulf %8, %9 : vector<8x128xf32>
    %cst_9 = arith.constant -5.000000e-01 : f32
    %11 = vector.broadcast %cst_9 : f32 to vector<8x128xf32>
    %12 = arith.addf %11, %10 : vector<8x128xf32>
    %13 = arith.mulf %8, %12 : vector<8x128xf32>
    %cst_10 = arith.constant 1.000000e+00 : f32
    %14 = vector.broadcast %cst_10 : f32 to vector<8x128xf32>
    %15 = arith.addf %14, %13 : vector<8x128xf32>
    %cst_11 = arith.constant 0.00833333377 : f32
    %16 = vector.broadcast %cst_11 : f32 to vector<8x128xf32>
    %17 = arith.mulf %8, %16 : vector<8x128xf32>
    %cst_12 = arith.constant -0.166666672 : f32
    %18 = vector.broadcast %cst_12 : f32 to vector<8x128xf32>
    %19 = arith.addf %18, %17 : vector<8x128xf32>
    %20 = arith.mulf %8, %19 : vector<8x128xf32>
    %cst_13 = arith.constant 1.000000e+00 : f32
    %21 = vector.broadcast %cst_13 : f32 to vector<8x128xf32>
    %22 = arith.addf %21, %20 : vector<8x128xf32>
    %23 = arith.mulf %7, %22 : vector<8x128xf32>
    %24 = arith.mulf %4, %15 : vector<8x128xf32>
    %25 = arith.mulf %5, %23 : vector<8x128xf32>
    %26 = arith.addf %24, %25 : vector<8x128xf32>
    %27 = arith.truncf %26 : vector<8x128xf32> to vector<8x128xbf16>
    %28 = arith.mulf %4, %23 : vector<8x128xf32>
    %29 = arith.mulf %5, %15 : vector<8x128xf32>
    %30 = arith.subf %28, %29 : vector<8x128xf32>
    %31 = arith.truncf %30 : vector<8x128xf32> to vector<8x128xbf16>
    %cst_14 = arith.constant dense<0.000000e+00> : vector<8x128xf32>
    %32 = tpu.matmul %27, %2, %cst_14 {dimension_numbers = #tpu.dot_dimension_numbers<[1], [0], [0], [1], [0, 0, 1, 1], [], []>} : vector<8x128xbf16>, vector<128x128xbf16>, vector<8x128xf32> -> vector<8x128xf32>
    %cst_15 = arith.constant dense<0.000000e+00> : vector<8x128xf32>
    %33 = tpu.matmul %31, %3, %cst_15 {dimension_numbers = #tpu.dot_dimension_numbers<[1], [0], [0], [1], [0, 0, 1, 1], [], []>} : vector<8x128xbf16>, vector<128x128xbf16>, vector<8x128xf32> -> vector<8x128xf32>
    %34 = arith.subf %32, %33 : vector<8x128xf32>
    %c0_16 = arith.constant 0 : index
    %c0_17 = arith.constant 0 : index
    %35 = vector.load %arg5[%c0_16, %c0_17] : memref<8x128xf32, #tpu.memory_space<vmem>>, vector<8x128xf32>
    tpu.vector_store %arg5[%c0_16, %c0_17], %34 {strides = array<i32>} : memref<8x128xf32, #tpu.memory_space<vmem>>, vector<8x128xf32>,
    return
  }
  func.func @transform_0(%arg0: i32) -> (i32, i32) {
    %c0_i32 = arith.constant 0 : i32
    %c0_i32_0 = arith.constant 0 : i32
    return %arg0, %c0_i32 : i32, i32
  }
  func.func @transform_1(%arg0: i32) -> (i32, i32) {
    %c0_i32 = arith.constant 0 : i32
    %c0_i32_0 = arith.constant 0 : i32
    return %arg0, %c0_i32 : i32, i32
  }
  func.func @transform_2(%arg0: i32) -> (i32, i32) {
    %c0_i32 = arith.constant 0 : i32
    %c0_i32_0 = arith.constant 0 : i32
    %c0_i32_1 = arith.constant 0 : i32
    return %c0_i32, %c0_i32_0 : i32, i32
  }
  func.func @transform_3(%arg0: i32) -> (i32, i32) {
    %c0_i32 = arith.constant 0 : i32
    %c0_i32_0 = arith.constant 0 : i32
    %c0_i32_1 = arith.constant 0 : i32
    return %c0_i32, %c0_i32_0 : i32, i32
  }
  func.func @transform_4(%arg0: i32) -> (i32, i32) {
    %c0_i32 = arith.constant 0 : i32
    %c0_i32_0 = arith.constant 0 : i32
    return %arg0, %c0_i32 : i32, i32
  }
}

</mosaic_0001>

<bundles_post_ra>
// kernel: tpu_custom_call.1
= control target key start
LH: loop header
LB: loop body
LE: loop exit
PB: predicated region body
PF: predicated region fallthrough
CT: control target
= control target key end

     0   :  { %9 = vsyncpa [#allocation3], 0  ;;  %s808_s0 = inlined_call_operand.hbm [shape: f32[8,128], index: 0, kind: input, shape index: {}]   ;;  %s809_s1 = inlined_call_operand.hbm [shape: bf16[8,128], index: 1, kind: input, shape index: {}]   ;;  %s810_s2 = inlined_call_operand.hbm [shape: bf16[128,128], index: 2, kind: input, shape index: {}]   ;;  %s811_s3 = inlined_call_operand.hbm [shape: bf16[128,128], index: 3, kind: input, shape index: {}]   ;;  %s812_s4 = inlined_call_operand.hbm [shape: f32[8,128], index: 4, kind: output, shape index: {}]  }
   0x1   :  { %10 = vsyncpa [#allocation6], 0 }
   0x2   :  { %11 = vsyncpa [#allocation9], 0 }
   0x3   :  { %12 = vsyncpa [#allocation4], 0  ;;  %s674_s15 = smov [#allocation5]   ;;  %s675_s17 = smov [#allocation2]  }
   0x4   :  { %s29_s16 = sshll.u32 %s674_s15, 4  ;;  %s19_s18 = sshll.u32 %s675_s17, 4  ;;  %s30_s16 = int_to_ptr.vmem [resolvable:$true] %s29_s16  ;;  %s20_s18 = int_to_ptr.vmem [resolvable:$true] %s19_s18 }
   0x5   :  { %s556_s21 = scalar_lea.hbm %s809_s1, 64 }
   0x6   :  { %p557_p0 = scmp.ne.s32.totalorder %s809_s1, %s556_s21  ;;  %p560_p1 = scmp.lt.u32.totalorder %s556_s21, %s809_s1 }
   0x8   :  { %p562_p2 = pnand %p560_p1, %p557_p0 }
   0xa   :  { %565 = shalt.err (!%p562_p2)
}
   0xb   :  { %s566_s26 = scalar_lea.vmem %s30_s16, 64  ;;  %p571_p4 = scmp.lt.s32.totalorder %s30_s16, %s30_s16 }
   0xc   :  { %p567_p3 = scmp.ne.s32.totalorder %s30_s16, %s566_s26  ;;  %p572_p5 = scmp.lt.s32.totalorder %s566_s26, %s566_s26 }
   0xe   :  { %p573_p6 = por %p572_p5, %p571_p4 }
  0x10   :  { %p574_p7 = pnand %p573_p6, %p567_p3 }
  0x12   :  { %577 = shalt.err (!%p574_p7)
}
  0x13   :  { %32 = dma.hbm_to_vmem [thread:$0]  %s809_s1, 64, %s30_s16, [#allocation6]  }
  0x14   :  { %s578_s5 = scalar_lea.hbm %s808_s0, 128 }
  0x15   :  { %p579_p8 = scmp.ne.s32.totalorder %s808_s0, %s578_s5  ;;  %p582_p9 = scmp.lt.u32.totalorder %s578_s5, %s808_s0 }
  0x17   :  { %p584_p10 = pnand %p582_p9, %p579_p8 }
  0x19   :  { %587 = shalt.err (!%p584_p10)
}
  0x1a   :  { %s588_s10 = scalar_lea.vmem %s20_s18, 128  ;;  %p593_p12 = scmp.lt.s32.totalorder %s20_s18, %s20_s18 }
  0x1b   :  { %p589_p11 = scmp.ne.s32.totalorder %s20_s18, %s588_s10  ;;  %p594_p13 = scmp.lt.s32.totalorder %s588_s10, %s588_s10 }
  0x1d   :  { %p595_p0 = por %p594_p13, %p593_p12 }
  0x1f   :  { %p596_p1 = pnand %p595_p0, %p589_p11 }
  0x21   :  { %599 = shalt.err (!%p596_p1)
}
  0x22   :  { %22 = dma.hbm_to_vmem [thread:$0]  %s808_s0, 128, %s20_s18, [#allocation3]  }
  0x23   :  { %s676_s12 = smov [#allocation7]   ;;  %s600_s16 = scalar_lea.hbm %s810_s2, 1024 }
  0x24   :  { %s38_s13 = sshll.u32 %s676_s12, 4  ;;  %p601_p2 = scmp.ne.s32.totalorder %s810_s2, %s600_s16  ;;  %s39_s13 = int_to_ptr.vmem [resolvable:$true] %s38_s13 }
  0x25   :  { %p604_p3 = scmp.lt.u32.totalorder %s600_s16, %s810_s2 }
  0x27   :  { %p606_p4 = pnand %p604_p3, %p601_p2 }
  0x29   :  { %609 = shalt.err (!%p606_p4)
}
  0x2a   :  { %s610_s22 = scalar_lea.vmem %s39_s13, 1024  ;;  %p615_p6 = scmp.lt.s32.totalorder %s39_s13, %s39_s13 }
  0x2b   :  { %p611_p5 = scmp.ne.s32.totalorder %s39_s13, %s610_s22  ;;  %p616_p7 = scmp.lt.s32.totalorder %s610_s22, %s610_s22 }
  0x2d   :  { %p617_p8 = por %p616_p7, %p615_p6 }
  0x2f   :  { %p618_p9 = pnand %p617_p8, %p611_p5 }
  0x31   :  { %621 = shalt.err (!%p618_p9)
}
  0x32   :  { %s677_s0 = smov 64   ;;  %s678_s18 = smov 4  }
  0x33   :  { %44 = dma.hbm_to_vmem [thread:$0]  %s810_s2, 1024, %s39_s13, [#allocation6], %s677_s0, %s677_s0, %s678_s18  }
  0x34   :  { %s679_s25 = smov [#allocation8]   ;;  %s622_s29 = scalar_lea.hbm %s811_s3, 1024 }
  0x35   :  { %s50_s26 = sshll.u32 %s679_s25, 4  ;;  %p623_p10 = scmp.ne.s32.totalorder %s811_s3, %s622_s29  ;;  %s51_s26 = int_to_ptr.vmem [resolvable:$true] %s50_s26 }
  0x36   :  { %p626_p11 = scmp.lt.u32.totalorder %s622_s29, %s811_s3 }
  0x38   :  { %p628_p12 = pnand %p626_p11, %p623_p10 }
  0x3a   :  { %631 = shalt.err (!%p628_p12)
}
  0x3b   :  { %s632_s8 = scalar_lea.vmem %s51_s26, 1024  ;;  %p637_p0 = scmp.lt.s32.totalorder %s51_s26, %s51_s26 }
  0x3c   :  { %p633_p13 = scmp.ne.s32.totalorder %s51_s26, %s632_s8  ;;  %p638_p1 = scmp.lt.s32.totalorder %s632_s8, %s632_s8 }
  0x3e   :  { %p639_p2 = por %p638_p1, %p637_p0 }
  0x40   :  { %p640_p3 = pnand %p639_p2, %p633_p13 }
  0x42   :  { %643 = shalt.err (!%p640_p3)
}
  0x43   :  { %56 = dma.hbm_to_vmem [thread:$0]  %s811_s3, 1024, %s51_s26, [#allocation9], %s677_s0, %s677_s0, %s678_s18  }
  0x44   :  { %666 = dma.done.wait [#allocation3], 128  }
  0x45   :  { %667 = vsyncadd [#allocation3], 4294967168 }
  0x46   :  { %668 = dma.done.wait [#allocation6], 1088  }
  0x47   :  { %669 = vsyncadd [#allocation6], 4294966208 }
  0x48   :  { %670 = dma.done.wait [#allocation9], 1024  }
  0x49   :  { %671 = vsyncadd [#allocation9], 4294966272  ;;  %v680_v0 = vmov 0.0   ;;  %vm681_vm0 = vmmov 0   ;;  %v540_v1 = vld [vmem:[#allocation7] sm:$0xff]   ;;  %v542_v3 = vld [vmem:[#allocation7 + $0x8] sm:$0xff]  }
  0x4a   :  { %451 = vmatprep.subr.bf16.mxu0 %v680_v0  ;;  %471 = vmatprep.subr.bf16.mxu1 %v680_v0  ;;  %v541_v2 = vld [vmem:[#allocation8] sm:$0xff]   ;;  %v543_v4 = vld [vmem:[#allocation8 + $0x8] sm:$0xff]   ;;  %v544_v5 = vld [vmem:[#allocation7 + $0x10] sm:$0xff]   ;;  %s682_s3 = smov [#allocation10]  }
  0x4b   :  { %467 = vmatprep.mubr.msk.bf16.mxu0 %vm681_vm0, %v680_v0  ;;  %487 = vmatprep.mubr.msk.bf16.mxu1 %vm681_vm0, %v680_v0  ;;  %v545_v6 = vld [vmem:[#allocation8 + $0x10] sm:$0xff]   ;;  %v546_v7 = vld [vmem:[#allocation7 + $0x18] sm:$0xff]   ;;  %v548_v9 = vld [vmem:[#allocation7 + $0x20] sm:$0xff]   ;;  %s388_s10 = sshll.u32 %s682_s3, 4  ;;  %s389_s10 = int_to_ptr.vmem [resolvable:$true] %s388_s10 }
  0x4c   :  { %452 = vmatpush3.bf16.msra.mxu0 %v540_v1  ;;  %472 = vmatpush3.bf16.msra.mxu1 %v541_v2  ;;  %v547_v8 = vld [vmem:[#allocation8 + $0x18] sm:$0xff]   ;;  %v549_v10 = vld [vmem:[#allocation8 + $0x20] sm:$0xff]   ;;  %v550_v11 = vld [vmem:[#allocation7 + $0x28] sm:$0xff]   ;;  %s644_s1 = scalar_lea.vmem %s389_s10, 128  ;;  %p649_p5 = scmp.lt.s32.totalorder %s389_s10, %s389_s10 }
  0x4d   :  { %453 = vmatprep.subr.bf16.mxu0 %v680_v0  ;;  %473 = vmatprep.subr.bf16.mxu1 %v680_v0  ;;  %v551_v12 = vld [vmem:[#allocation8 + $0x28] sm:$0xff]   ;;  %v552_v13 = vld [vmem:[#allocation7 + $0x30] sm:$0xff]   ;;  %v554_v15 = vld [vmem:[#allocation7 + $0x38] sm:$0xff]   ;;  %p645_p4 = scmp.ne.s32.totalorder %s389_s10, %s644_s1  ;;  %p650_p6 = scmp.lt.s32.totalorder %s644_s1, %s644_s1 }
  0x4e   :  { %v553_v14 = vld [vmem:[#allocation8 + $0x30] sm:$0xff]   ;;  %v555_v17 = vld [vmem:[#allocation8 + $0x38] sm:$0xff]  }
  0x4f   :  { %v70_v16 = vld [vmem:[#allocation2] sm:$0xff]  ;;  %v280_v19 = vld [vmem:[#allocation5] sm:$0xf]  ;;  %p651_p7 = por %p650_p6, %p649_p5 }
  0x50   :  { %454 = vmatpush3.bf16.msra.mxu0 %v542_v3  ;;  %474 = vmatpush3.bf16.msra.mxu1 %v543_v4  ;;  %v71_v18 = vpack.c.bf16 %v70_v16, %v70_v16  ;;  %v281_v20 = vunpack.c.l.bf16 %v280_v19 }
  0x51   :  { %455 = vmatprep.subr.bf16.mxu0 %v680_v0  ;;  %475 = vmatprep.subr.bf16.mxu1 %v680_v0  ;;  %p652_p8 = pnand %p651_p7, %p645_p4 }
  0x52   :  { %v282_v21 = vmul.f32 %v281_v20, %v281_v20 }
  0x54   :  { %456 = vmatpush3.bf16.msra.mxu0 %v544_v5  ;;  %476 = vmatpush3.bf16.msra.mxu1 %v545_v6  ;;  %v287_v22 = vmul.f32 0.008333334, %v282_v21  ;;  %v283_v23 = vmul.f32 0.041666668, %v282_v21 }
  0x55   :  { %457 = vmatprep.subr.bf16.mxu0 %v680_v0  ;;  %477 = vmatprep.subr.bf16.mxu1 %v680_v0 }
  0x56   :  { %v288_v24 = vadd.f32 -0.16666667, %v287_v22  ;;  %v284_v25 = vadd.f32 -0.5, %v283_v23 }
  0x58   :  { %458 = vmatpush3.bf16.msra.mxu0 %v546_v7  ;;  %478 = vmatpush3.bf16.msra.mxu1 %v547_v8  ;;  %v289_v26 = vmul.f32 %v288_v24, %v282_v21  ;;  %v285_v27 = vmul.f32 %v284_v25, %v282_v21 }
  0x59   :  { %459 = vmatprep.subr.bf16.mxu0 %v680_v0  ;;  %479 = vmatprep.subr.bf16.mxu1 %v680_v0 }
  0x5a   :  { %v290_v28 = vadd.f32 1.0, %v289_v26  ;;  %v286_v29 = vadd.f32 1.0, %v285_v27 }
  0x5c   :  { %460 = vmatpush3.bf16.msra.mxu0 %v548_v9  ;;  %480 = vmatpush3.bf16.msra.mxu1 %v549_v10  ;;  %v291_v30 = vmul.f32 %v290_v28, %v281_v20 }
  0x5d   :  { %461 = vmatprep.subr.bf16.mxu0 %v680_v0  ;;  %481 = vmatprep.subr.bf16.mxu1 %v680_v0 }
  0x60   :  { %462 = vmatpush3.bf16.msra.mxu0 %v550_v11  ;;  %482 = vmatpush3.bf16.msra.mxu1 %v551_v12 }
  0x61   :  { %463 = vmatprep.subr.bf16.mxu0 %v680_v0  ;;  %483 = vmatprep.subr.bf16.mxu1 %v680_v0 }
  0x64   :  { %464 = vmatpush3.bf16.msra.mxu0 %v552_v13  ;;  %484 = vmatpush3.bf16.msra.mxu1 %v553_v14 }
  0x65   :  { %465 = vmatprep.subr.bf16.mxu0 %v680_v0  ;;  %485 = vmatprep.subr.bf16.mxu1 %v680_v0 }
  0x68   :  { %466 = vmatpush3.bf16.msra.mxu0 %v554_v15  ;;  %486 = vmatpush3.bf16.msra.mxu1 %v555_v17 }
  0x69   :  { %491 = vmatprep.subr.bf16.mxu0 %v680_v0  ;;  %511 = vmatprep.subr.bf16.mxu1 %v680_v0 }
  0x6b   :  { %468 = vmatmul.mubr.bf16.vlgmr.msra.gmra.mrb[0].mxu0 %v71_v18  ;;  %488 = vmatmul.mubr.bf16.vlgmr.msra.gmra.mrb[0].mxu1 %v71_v18 }
  0x6c   :  { %492 = vmatpush3.bf16.msra.mxu0 %v540_v1  ;;  %512 = vmatpush3.bf16.msra.mxu1 %v541_v2 }
  0x6d   :  { %493 = vmatprep.subr.bf16.mxu0 %v680_v0  ;;  %513 = vmatprep.subr.bf16.mxu1 %v680_v0 }
  0x6e   :  { %507 = vmatprep.mubr.msk.bf16.mxu0 %vm681_vm0, %v680_v0  ;;  %527 = vmatprep.mubr.msk.bf16.mxu1 %vm681_vm0, %v680_v0 }
  0x70   :  { %494 = vmatpush3.bf16.msra.mxu0 %v542_v3  ;;  %514 = vmatpush3.bf16.msra.mxu1 %v543_v4 }
  0x71   :  { %495 = vmatprep.subr.bf16.mxu0 %v680_v0  ;;  %515 = vmatprep.subr.bf16.mxu1 %v680_v0 }
  0x74   :  { %496 = vmatpush3.bf16.msra.mxu0 %v544_v5  ;;  %516 = vmatpush3.bf16.msra.mxu1 %v545_v6 }
  0x75   :  { %497 = vmatprep.subr.bf16.mxu0 %v680_v0  ;;  %517 = vmatprep.subr.bf16.mxu1 %v680_v0 }
  0x78   :  { %498 = vmatpush3.bf16.msra.mxu0 %v546_v7  ;;  %518 = vmatpush3.bf16.msra.mxu1 %v547_v8 }
  0x79   :  { %499 = vmatprep.subr.bf16.mxu0 %v680_v0  ;;  %519 = vmatprep.subr.bf16.mxu1 %v680_v0 }
  0x7c   :  { %500 = vmatpush3.bf16.msra.mxu0 %v548_v9  ;;  %520 = vmatpush3.bf16.msra.mxu1 %v549_v10 }
  0x7d   :  { %501 = vmatprep.subr.bf16.mxu0 %v680_v0  ;;  %521 = vmatprep.subr.bf16.mxu1 %v680_v0 }
  0x80   :  { %502 = vmatpush3.bf16.msra.mxu0 %v550_v11  ;;  %522 = vmatpush3.bf16.msra.mxu1 %v551_v12 }
  0x81   :  { %503 = vmatprep.subr.bf16.mxu0 %v680_v0  ;;  %523 = vmatprep.subr.bf16.mxu1 %v680_v0 }
  0x84   :  { %504 = vmatpush3.bf16.msra.mxu0 %v552_v13  ;;  %524 = vmatpush3.bf16.msra.mxu1 %v553_v14 }
  0x85   :  { %505 = vmatprep.subr.bf16.mxu0 %v680_v0  ;;  %525 = vmatprep.subr.bf16.mxu1 %v680_v0 }
  0x88   :  { %506 = vmatpush3.bf16.msra.mxu0 %v554_v15  ;;  %526 = vmatpush3.bf16.msra.mxu1 %v555_v17 }
 0x13e   :  { %v186_v31 = vpop.f32.mrb[0].mxu0  ;;  %v274_v34 = vpop.f32.mrb[0].mxu1 }
 0x13f   :  { %v292_v32 = vmul.f32 %v286_v29, %v186_v31  ;;  %v296_v33 = vmul.f32 %v291_v30, %v186_v31  ;;  %v469_v35 = vpop.f32.mrb[1].mxu0  ;;  %v293_v36 = vmul.f32 %v291_v30, %v274_v34  ;;  %v297_v37 = vmul.f32 %v286_v29, %v274_v34  ;;  %v489_v38 = vpop.f32.mrb[1].mxu1 }
 0x140   :  { %v189_v39 = vpop.f32.mrb[2].mxu0  ;;  %v277_v40 = vpop.f32.mrb[2].mxu1 }
 0x141   :  { %v470_v41 = vpop.f32.mrb[3].mxu0  ;;  %v294_v42 = vadd.f32 %v293_v36, %v292_v32  ;;  %v298_v43 = vsub.f32 %v296_v33, %v297_v37  ;;  %v490_v44 = vpop.f32.mrb[3].mxu1 }
 0x143   :  { %v295_v45 = vpack.c.bf16 %v294_v42, %v294_v42  ;;  %v299_v46 = vpack.c.bf16 %v298_v43, %v298_v43 }
 0x145   :  { %508 = vmatmul.mubr.bf16.vlgmr.msra.gmra.mrb[4].mxu0 %v295_v45  ;;  %528 = vmatmul.mubr.bf16.vlgmr.msra.gmra.mrb[4].mxu1 %v299_v46 }
 0x218   :  { %v334_v47 = vpop.f32.mrb[4].mxu0  ;;  %v374_v48 = vpop.f32.mrb[4].mxu1 }
 0x219   :  { %v380_v49 = vsub.f32 %v334_v47, %v374_v48  ;;  %v509_v50 = vpop.f32.mrb[5].mxu0  ;;  %v529_v51 = vpop.f32.mrb[5].mxu1 }
 0x21a   :  { %v337_v52 = vpop.f32.mrb[6].mxu0  ;;  %v377_v53 = vpop.f32.mrb[6].mxu1 }
 0x21b   :  { %381 = vst [vmem:[#allocation10] sm:$0xff] %v380_v49  ;;  %v510_v54 = vpop.f32.mrb[7].mxu0  ;;  %v530_v55 = vpop.f32.mrb[7].mxu1 }
 0x21c   :  { %655 = shalt.err (!%p652_p8)
}
 0x21d   :  { %s656_s13 = scalar_lea.hbm %s812_s4, 128 }
 0x21e   :  { %p657_p9 = scmp.ne.s32.totalorder %s812_s4, %s656_s13  ;;  %p660_p10 = scmp.lt.u32.totalorder %s656_s13, %s812_s4 }
 0x220   :  { %p662_p11 = pnand %p660_p10, %p657_p9 }
 0x222   :  { %665 = shalt.err (!%p662_p11)
}
 0x223   :  { %391 = dma.vmem_to_hbm [thread:$0]  %s389_s10, 128, %s812_s4, [#allocation4]  }
 0x224   :  { %672 = dma.done.wait [#allocation4], 128  }
 0x225   :  { %673 = vsyncadd [#allocation4], 4294967168 }
 0x226   :  { %395 = vsyncpa [#allocation3], 1 }
 0x227   :  { %396 = vsyncpa [#allocation6], 1 }
 0x228   :  { %397 = vsyncpa [#allocation9], 1 }
 0x229   :  { %398 = vsyncpa [#allocation4], 1 }

</bundles_post_ra>
